<compile_context>
chip_gen: v7x
topology: tpu7x:2x2x1
jax: 0.10.0
libtpu: 0.0.40
codegen_flags: <defaults>
</compile_context>

<pallas_src>
import jax
import jax.numpy as jnp
from jax.experimental import pallas as pl
from jax.experimental.pallas import tpu as pltpu

IN_FEATURES = 3 * 32 * 32   # 3072
HIDDEN = 128
OUT = 1

# Batch-tile and scoped-VMEM choices (see header): one setting safe on v5e/v6e/v7x.
DEFAULT_BLOCK_B = 1024
VMEM_LIMIT_BYTES = 40 * 1024 * 1024


def mlp_kernel(x_ref, w1_ref, b1_ref, w2_ref, b2_ref, o_ref):
    # x_ref:  (Bt, 3072) f32       w1_ref: (3072, 128) bf16
    # b1_ref: (1, 128)   f32       w2_ref: (1, 128)    f32  (row form of the (128,1) weight)
    # b2_ref: (1, 1)     f32 in SMEM
    # o_ref:  (Bt, 1)    f32
    x_bf = x_ref[...].astype(jnp.bfloat16)                 # cast in-kernel, under DMA shadow
    h = jnp.dot(x_bf, w1_ref[...],
                preferred_element_type=jnp.float32)        # MXU, bf16 in / f32 acc
    h = jnp.maximum(h + b1_ref[...], 0.0)                  # bias + ReLU (VPU, f32)
    # 128 -> 1 projection on VPU+XLU (avoids a 1-lane-wide MXU pass):
    logits = jnp.sum(h * w2_ref[...], axis=-1, keepdims=True) + b2_ref[0, 0]
    o_ref[...] = jax.nn.sigmoid(logits).astype(o_ref.dtype)


def _round_up(n, m):
    return ((n + m - 1) // m) * m


def prepare_params(w1, b1, w2, b2):
    """One-time conversion of the Linear params to kernel-ready dtype/shape.

    Hoisted out of the per-call path so repeated inference calls do not re-cast
    (re-read + re-write) the 1.5 MiB W1 every invocation.
    """
    w1_bf = w1.astype(jnp.bfloat16)                        # (3072, 128) MXU operand
    b1_row = b1.reshape(1, HIDDEN).astype(jnp.float32)     # (1, 128)
    w2_row = w2.reshape(1, HIDDEN).astype(jnp.float32)     # (128, 1) -> (1, 128) row
    b2_s = b2.reshape(1, 1).astype(jnp.float32)            # scalar, lives in SMEM
    return w1_bf, b1_row, w2_row, b2_s


def real_fake_classifier(x, params, *, block_b=DEFAULT_BLOCK_B):
    """x: (B, 3, 32, 32) float32, params from prepare_params -> (B, 1) float32 probs."""
    w1_bf, b1_row, w2_row, b2_s = params
    B = x.shape[0]
    xf = x.reshape(B, -1)                                  # matches torch .view(B, -1); no copy

    # Shrink the tile for small batches (single grid step, minimal masked tail);
    # keep Bt a multiple of 8 for the (8, 128) block-shape rule.
    bt = min(block_b, _round_up(B, 8))
    n_tiles = pl.cdiv(B, bt)                               # ragged last block is masked by Pallas

    out = pl.pallas_call(
        mlp_kernel,
        out_shape=jax.ShapeDtypeStruct((B, OUT), jnp.float32),
        grid=(n_tiles,),
        in_specs=[
            # x: tiled over batch, f32 straight from HBM (double-buffered by Pallas).
            pl.BlockSpec((bt, IN_FEATURES), lambda i: (i, 0)),
            # Weights / b1 / w2 row: constant index map -> DMA'd once, VMEM-resident.
            pl.BlockSpec((IN_FEATURES, HIDDEN), lambda i: (0, 0)),
            pl.BlockSpec((1, HIDDEN), lambda i: (0, 0)),
            pl.BlockSpec((1, HIDDEN), lambda i: (0, 0)),
            # Scalar b2 in SMEM (no padded VMEM tile).
            pl.BlockSpec(memory_space=pltpu.MemorySpace.SMEM),
        ],
        out_specs=pl.BlockSpec((bt, OUT), lambda i: (i, 0)),
        compiler_params=pltpu.CompilerParams(
            dimension_semantics=("parallel",),
            vmem_limit_bytes=VMEM_LIMIT_BYTES,
        ),
    )(xf, w1_bf, b1_row, w2_row, b2_s)

    return out


def init_params(key):
    """Deterministic synthetic init (shapes from the module's __init__)."""
    k1, k2, k3, k4 = jax.random.split(key, 4)
    # PyTorch default Linear init: U(-1/sqrt(fan_in), 1/sqrt(fan_in))
    bound1 = 1.0 / jnp.sqrt(IN_FEATURES)
    bound2 = 1.0 / jnp.sqrt(HIDDEN)
    w1 = jax.random.uniform(k1, (IN_FEATURES, HIDDEN), jnp.float32, -bound1, bound1)
    b1 = jax.random.uniform(k2, (HIDDEN,), jnp.float32, -bound1, bound1)
    w2 = jax.random.uniform(k3, (HIDDEN, OUT), jnp.float32, -bound2, bound2)
    b2 = jax.random.uniform(k4, (OUT,), jnp.float32, -bound2, bound2)
    return w1, b1, w2, b2


if __name__ == "__main__":
    key = jax.random.PRNGKey(0)
    k_x, k_p = jax.random.split(key)

    B = 2
    x = jax.random.normal(k_x, (B, 3, 32, 32), jnp.float32)
    w1, b1, w2, b2 = init_params(k_p)
    params = prepare_params(w1, b1, w2, b2)                # one-time, out of the call path

    out = jax.block_until_ready(real_fake_classifier(x, params))

    # Pure-JAX f32 reference of the same math. The kernel feeds bf16 x/W1 to the
    # MXU, so tolerance is loosened vs an all-f32 comparison.
    xf = x.reshape(B, -1)
    ref = jax.nn.sigmoid(jnp.maximum(xf @ w1 + b1, 0.0) @ w2 + b2)
    assert out.shape == (B, 1)
    assert jnp.allclose(out, ref, atol=2e-2, rtol=2e-2), (out, ref)

    print("KERNEL_OK")
</pallas_src>

<mosaic_0001>
module attributes {stable_mosaic.version = 11 : i64} {
  func.func @mlp_kernel(%arg0: i32, %arg1: memref<8x3072xf32, #tpu.memory_space<vmem>>, %arg2: memref<3072x128xbf16, #tpu.memory_space<vmem>>, %arg3: memref<1x128xf32, #tpu.memory_space<vmem>>, %arg4: memref<1x128xf32, #tpu.memory_space<vmem>>, %arg5: memref<1x1xf32, #tpu.memory_space<smem>>, %arg6: memref<8x1xf32, #tpu.memory_space<vmem>>) attributes {dimension_semantics = [#tpu.dimension_semantics<parallel>], iteration_bounds = array<i64: 1>, scalar_prefetch = 0 : i64, scratch_operands = 0 : i64, tpu.core_type = #tpu.core_type<tc>, window_params = [{transform_indices = @transform_0, window_bounds = array<i64: 8, 3072>}, {pipeline_mode = #tpu.pipeline_mode<synchronous>, transform_indices = @transform_1, window_bounds = array<i64: 3072, 128>}, {pipeline_mode = #tpu.pipeline_mode<synchronous>, transform_indices = @transform_2, window_bounds = array<i64: 1, 128>}, {pipeline_mode = #tpu.pipeline_mode<synchronous>, transform_indices = @transform_3, window_bounds = array<i64: 1, 128>}, {transform_indices = @transform_4, window_bounds = array<i64: 1, 1>}, {transform_indices = @transform_5, window_bounds = array<i64: 8, 1>}]} {
    %c0 = arith.constant 0 : index
    %c0_0 = arith.constant 0 : index
    %0 = vector.load %arg1[%c0, %c0_0] : memref<8x3072xf32, #tpu.memory_space<vmem>>, vector<8x3072xf32>
    %1 = arith.truncf %0 : vector<8x3072xf32> to vector<8x3072xbf16>
    %c0_1 = arith.constant 0 : index
    %c0_2 = arith.constant 0 : index
    %2 = vector.load %arg2[%c0_1, %c0_2] : memref<3072x128xbf16, #tpu.memory_space<vmem>>, vector<3072x128xbf16>
    %cst = arith.constant dense<0.000000e+00> : vector<8x128xf32>
    %3 = tpu.matmul %1, %2, %cst {dimension_numbers = #tpu.dot_dimension_numbers<[1], [0], [0], [1], [0, 0, 1, 1], [], []>} : vector<8x3072xbf16>, vector<3072x128xbf16>, vector<8x128xf32> -> vector<8x128xf32>
    %c0_3 = arith.constant 0 : index
    %c0_4 = arith.constant 0 : index
    %4 = vector.load %arg3[%c0_3, %c0_4] : memref<1x128xf32, #tpu.memory_space<vmem>>, vector<1x128xf32>
    %5 = vector.broadcast %4 : vector<1x128xf32> to vector<8x128xf32>
    %6 = arith.addf %3, %5 : vector<8x128xf32>
    %cst_5 = arith.constant 0.000000e+00 : f32
    %7 = vector.broadcast %cst_5 : f32 to vector<8x128xf32>
    %8 = arith.maximumf %6, %7 : vector<8x128xf32>
    %c0_6 = arith.constant 0 : index
    %c0_7 = arith.constant 0 : index
    %9 = vector.load %arg4[%c0_6, %c0_7] : memref<1x128xf32, #tpu.memory_space<vmem>>, vector<1x128xf32>
    %10 = vector.broadcast %9 : vector<1x128xf32> to vector<8x128xf32>
    %11 = arith.mulf %8, %10 : vector<8x128xf32>
    %cst_8 = arith.constant dense<0.000000e+00> : vector<8xf32>
    %12 = vector.multi_reduction <add>, %11, %cst_8 [1] : vector<8x128xf32> to vector<8xf32>
    %13 = vector.shape_cast %12 : vector<8xf32> to vector<8x1xf32>
    %c0_9 = arith.constant 0 : index
    %c0_10 = arith.constant 0 : index
    %14 = memref.load %arg5[%c0_9, %c0_10] : memref<1x1xf32, #tpu.memory_space<smem>>
    %15 = vector.broadcast %14 : f32 to vector<8x1xf32>
    %16 = arith.addf %13, %15 : vector<8x1xf32>
    %17 = arith.negf %16 : vector<8x1xf32>
    %18 = math.exp %17 : vector<8x1xf32>
    %cst_11 = arith.constant 1.000000e+00 : f32
    %19 = vector.broadcast %cst_11 : f32 to vector<8x1xf32>
    %20 = arith.addf %19, %18 : vector<8x1xf32>
    %21 = arith.divf %19, %20 : vector<8x1xf32>
    %c0_12 = arith.constant 0 : index
    %c0_13 = arith.constant 0 : index
    %22 = vector.load %arg6[%c0_12, %c0_13] : memref<8x1xf32, #tpu.memory_space<vmem>>, vector<8x1xf32>
    tpu.vector_store %arg6[%c0_12, %c0_13], %21 {strides = array<i32>} : memref<8x1xf32, #tpu.memory_space<vmem>>, vector<8x1xf32>,
    return
  }
  func.func @transform_0(%arg0: i32) -> (i32, i32) {
    %c0_i32 = arith.constant 0 : i32
    %c0_i32_0 = arith.constant 0 : i32
    return %arg0, %c0_i32 : i32, i32
  }
  func.func @transform_1(%arg0: i32) -> (i32, i32) {
    %c0_i32 = arith.constant 0 : i32
    %c0_i32_0 = arith.constant 0 : i32
    %c0_i32_1 = arith.constant 0 : i32
    return %c0_i32, %c0_i32_0 : i32, i32
  }
  func.func @transform_2(%arg0: i32) -> (i32, i32) {
    %c0_i32 = arith.constant 0 : i32
    %c0_i32_0 = arith.constant 0 : i32
    %c0_i32_1 = arith.constant 0 : i32
    return %c0_i32, %c0_i32_0 : i32, i32
  }
  func.func @transform_3(%arg0: i32) -> (i32, i32) {
    %c0_i32 = arith.constant 0 : i32
    %c0_i32_0 = arith.constant 0 : i32
    %c0_i32_1 = arith.constant 0 : i32
    return %c0_i32, %c0_i32_0 : i32, i32
  }
  func.func @transform_4(%arg0: i32) -> (i32, i32) {
    %c0_i32 = arith.constant 0 : i32
    %c0_i32_0 = arith.constant 0 : i32
    %c0_i32_1 = arith.constant 0 : i32
    return %c0_i32, %c0_i32_0 : i32, i32
  }
  func.func @transform_5(%arg0: i32) -> (i32, i32) {
    %c0_i32 = arith.constant 0 : i32
    %c0_i32_0 = arith.constant 0 : i32
    return %arg0, %c0_i32 : i32, i32
  }
}

</mosaic_0001>

<bundles_post_ra>
// kernel: tpu_custom_call.1
= control target key start
LH: loop header
LB: loop body
LE: loop exit
PB: predicated region body
PF: predicated region fallthrough
CT: control target
= control target key end

     0   :  { %11 = vsyncpa [#allocation4], 0  ;;  %s3293_s0 = inlined_call_operand.hbm [shape: f32[2,3072], index: 0, kind: input, shape index: {}]   ;;  %s3294_s1 = inlined_call_operand.hbm [shape: bf16[3072,128], index: 1, kind: input, shape index: {}]   ;;  %s3295_s2 = inlined_call_operand.vmem [shape: f32[1,128], index: 2, kind: input, shape index: {}]   ;;  %s3296_s3 = inlined_call_operand.vmem [shape: f32[1,128], index: 3, kind: input, shape index: {}]   ;;  %s3297_s4 = inlined_call_operand.<no memory space> [shape: f32[1,1], index: 4, kind: input, shape index: {}]   ;;  %s3298_s5 = inlined_call_operand.vmem [shape: f32[2,1], index: 5, kind: output, shape index: {}]  }
   0x1   :  { %12 = vsyncpa [#allocation6], 0 }
   0x2   :  { %17 = vsyncadd [#allocation4], 2304  ;;  %s3194_s18 = smov [#allocation3]   ;;  %s3146_s22 = scalar_lea.hbm %s3293_s0, 768 }
   0x3   :  { %s18_s19 = sshll.u32 %s3194_s18, 4  ;;  %p3147_p0 = scmp.ne.s32.totalorder %s3293_s0, %s3146_s22  ;;  %s19_s19 = int_to_ptr.vmem [resolvable:$true] %s18_s19 }
   0x4   :  { %p3150_p1 = scmp.lt.u32.totalorder %s3146_s22, %s3293_s0 }
   0x6   :  { %p3152_p2 = pnand %p3150_p1, %p3147_p0 }
   0x8   :  { %3155 = shalt.err (!%p3152_p2)
}
   0x9   :  { %s3156_s27 = scalar_lea.vmem %s19_s19, 768  ;;  %s3160_s28 = scalar_lea.vmem %s19_s19, 3072 }
   0xa   :  { %p3157_p3 = scmp.ne.s32.totalorder %s19_s19, %s3156_s27  ;;  %p3161_p4 = scmp.lt.s32.totalorder %s19_s19, %s19_s19 }
   0xb   :  { %p3162_p5 = scmp.lt.s32.totalorder %s3160_s28, %s3156_s27 }
   0xd   :  { %p3163_p6 = por %p3162_p5, %p3161_p4 }
   0xf   :  { %p3164_p7 = pnand %p3163_p6, %p3157_p3 }
  0x11   :  { %3167 = shalt.err (!%p3164_p7)
}
  0x12   :  { %s3195_s29 = smov 768   ;;  %s3196_s30 = smov 48  }
  0x13   :  { %24 = dma.hbm_to_vmem [thread:$0]  %s3293_s0, 768, %s19_s19, [#allocation4], %s3195_s29, %s3195_s29, %s3196_s30  }
  0x14   :  { %s3197_s8 = smov [#allocation5]   ;;  %s3168_s12 = scalar_lea.hbm %s3294_s1, 24576 }
  0x15   :  { %s30_s9 = sshll.u32 %s3197_s8, 4  ;;  %p3169_p8 = scmp.ne.s32.totalorder %s3294_s1, %s3168_s12  ;;  %s31_s9 = int_to_ptr.vmem [resolvable:$true] %s30_s9 }
  0x16   :  { %p3172_p9 = scmp.lt.u32.totalorder %s3168_s12, %s3294_s1 }
  0x18   :  { %p3174_p10 = pnand %p3172_p9, %p3169_p8 }
  0x1a   :  { %3177 = shalt.err (!%p3174_p10)
}
  0x1b   :  { %s3178_s17 = scalar_lea.vmem %s31_s9, 24576  ;;  %p3183_p12 = scmp.lt.s32.totalorder %s31_s9, %s31_s9 }
  0x1c   :  { %p3179_p11 = scmp.ne.s32.totalorder %s31_s9, %s3178_s17  ;;  %p3184_p13 = scmp.lt.s32.totalorder %s3178_s17, %s3178_s17 }
  0x1e   :  { %p3185_p0 = por %p3184_p13, %p3183_p12 }
  0x20   :  { %p3186_p1 = pnand %p3185_p0, %p3179_p11 }
  0x22   :  { %3189 = shalt.err (!%p3186_p1)
}
  0x23   :  { %s3198_s0 = smov 64   ;;  %s3199_s18 = smov 4  }
  0x24   :  { %36 = dma.hbm_to_vmem [thread:$0]  %s3294_s1, 24576, %s31_s9, [#allocation6], %s3198_s0, %s3198_s0, %s3199_s18  }
  0x25   :  { %3190 = dma.done.wait [#allocation4], 3072  }
  0x26   :  { %3191 = vsyncadd [#allocation4], 4294964224 }
  0x27   :  { %3192 = dma.done.wait [#allocation6], 24576  }
  0x28   :  { %3193 = vsyncadd [#allocation6], 4294942720  ;;  %v2914_v0 = vld [vmem:[#allocation5 + $0x40] sm:$0xff]   ;;  %v2918_v4 = vld [vmem:[#allocation5 + $0x48] sm:$0xff]   ;;  %v3200_v24 = vmov 1983009808   ;;  %v105_v26 = vlaneseq }
  0x29   :  { %v2915_v1 = vld [vmem:[#allocation5 + $0xc0] sm:$0xff]   ;;  %2643 = vmatprep.subr.bf16.mxu0 %v2914_v0  ;;  %v2919_v5 = vld [vmem:[#allocation5 + $0xc8] sm:$0xff]   ;;  %v2922_v8 = vld [vmem:[#allocation5 + $0x50] sm:$0xff]   ;;  %v103_v25 = vunpack.c.l.s4 %v3200_v24  ;;  %vm2405_vm0 = vcmask 7168  }
  0x2a   :  { %v2916_v2 = vld [vmem:[#allocation5] sm:$0xff]   ;;  %2665 = vmatprep.subr.bf16.mxu1 %v2915_v1  ;;  %v2920_v6 = vld [vmem:[#allocation5 + $0x8] sm:$0xff]   ;;  %v2923_v9 = vld [vmem:[#allocation5 + $0xd0] sm:$0xff]   ;;  %v106_v32 = vshrl.u32 %v105_v26, 7 }
  0x2b   :  { %v2917_v3 = vld [vmem:[#allocation5 + $0x80] sm:$0xff]   ;;  %2644 = vmatpush3.bf16.msra.mxu0 %v2916_v2  ;;  %v2921_v7 = vld [vmem:[#allocation5 + $0x88] sm:$0xff]   ;;  %v2924_v10 = vld [vmem:[#allocation5 + $0x10] sm:$0xff]   ;;  %v104_v31 = vunpack.c.0.s8 %v103_v25 }
  0x2c   :  { %2666 = vmatpush3.bf16.msra.mxu1 %v2917_v3  ;;  %2645 = vmatprep.subr.bf16.mxu0 %v2918_v4  ;;  %v2925_v11 = vld [vmem:[#allocation5 + $0x90] sm:$0xff]   ;;  %v2926_v12 = vld [vmem:[#allocation5 + $0x58] sm:$0xff]   ;;  %v2930_v16 = vld [vmem:[#allocation5 + $0x60] sm:$0xff]  }
  0x2d   :  { %2667 = vmatprep.subr.bf16.mxu1 %v2919_v5  ;;  %v2927_v13 = vld [vmem:[#allocation5 + $0xd8] sm:$0xff]   ;;  %v2931_v17 = vld [vmem:[#allocation5 + $0xe0] sm:$0xff]   ;;  %v2934_v20 = vld [vmem:[#allocation5 + $0x68] sm:$0xff]   ;;  %v3255_v37 = vsub.s32 %v104_v31, %v106_v32 }
  0x2e   :  { %v2928_v14 = vld [vmem:[#allocation5 + $0x18] sm:$0xff]   ;;  %v2932_v18 = vld [vmem:[#allocation5 + $0x20] sm:$0xff]   ;;  %v2935_v21 = vld [vmem:[#allocation5 + $0xe8] sm:$0xff]  }
  0x2f   :  { %2646 = vmatpush3.bf16.msra.mxu0 %v2920_v6  ;;  %v2929_v15 = vld [vmem:[#allocation5 + $0x98] sm:$0xff]   ;;  %v2933_v19 = vld [vmem:[#allocation5 + $0xa0] sm:$0xff]   ;;  %v2936_v22 = vld [vmem:[#allocation5 + $0x28] sm:$0xff]  }
  0x30   :  { %2668 = vmatpush3.bf16.msra.mxu1 %v2921_v7  ;;  %2647 = vmatprep.subr.bf16.mxu0 %v2922_v8  ;;  %v2937_v23 = vld [vmem:[#allocation5 + $0xa8] sm:$0xff]   ;;  %v2938_v27 = vld [vmem:[#allocation5 + $0x70] sm:$0xff]   ;;  %v2942_v33 = vld [vmem:[#allocation5 + $0x78] sm:$0xff]  }
  0x31   :  { %2669 = vmatprep.subr.bf16.mxu1 %v2923_v9  ;;  %v2939_v28 = vld [vmem:[#allocation5 + $0xf0] sm:$0xff]   ;;  %v2943_v34 = vld [vmem:[#allocation5 + $0xf8] sm:$0xff]   ;;  %v2952_v44 = vld [vmem:[#allocation5 + $0x140] sm:$0xff]  }
  0x32   :  { %v2940_v29 = vld [vmem:[#allocation5 + $0x30] sm:$0xff]   ;;  %v2944_v35 = vld [vmem:[#allocation5 + $0x38] sm:$0xff]   ;;  %v2953_v47 = vld [vmem:[#allocation5 + $0x1c0] sm:$0xff]  }
  0x33   :  { %2648 = vmatpush3.bf16.msra.mxu0 %v2924_v10  ;;  %v2941_v30 = vld [vmem:[#allocation5 + $0xb0] sm:$0xff]   ;;  %v2945_v36 = vld [vmem:[#allocation5 + $0xb8] sm:$0xff]   ;;  %v2954_v50 = vld [vmem:[#allocation5 + $0x100] sm:$0xff]  }
  0x34   :  { %2670 = vmatpush3.bf16.msra.mxu1 %v2925_v11  ;;  %2649 = vmatprep.subr.bf16.mxu0 %v2926_v12  ;;  %v2946_v38 = vld [vmem:[#allocation3] ss:$48 sps:$4 sm:$0xff]   ;;  %v2950_v40 = vld [vmem:[#allocation3 + $0x4] ss:$48 sps:$4 sm:$0xff]   ;;  %v2956_v56 = vld [vmem:[#allocation5 + $0x148] sm:$0xff]  }
  0x35   :  { %2671 = vmatprep.subr.bf16.mxu1 %v2927_v13  ;;  %v2948_v39 = vld [vmem:[#allocation3 + $0x60] ss:$48 sps:$4 sm:$0xff]   ;;  %v2951_v41 = vld [vmem:[#allocation3 + $0x64] ss:$48 sps:$4 sm:$0xff]   ;;  %v108_v42 = vrot.slane %v2946_v38, %v3255_v37  ;;  %v115_v45 = vrot.slane %v2950_v40, %v3255_v37  ;;  %v2957_v59 = vld [vmem:[#allocation5 + $0x1c8] sm:$0xff]  }
  0x36   :  { %v122_v43 = vrot.slane %v2948_v39, %v3255_v37  ;;  %v129_v46 = vrot.slane %v2951_v41, %v3255_v37  ;;  %v2955_v53 = vld [vmem:[#allocation5 + $0x180] sm:$0xff]   ;;  %v2958_v60 = vld [vmem:[#allocation5 + $0x108] sm:$0xff]   ;;  %v2960_v62 = vld [vmem:[#allocation5 + $0x150] sm:$0xff]  }
  0x37   :  { %2650 = vmatpush3.bf16.msra.mxu0 %v2928_v14  ;;  %v2959_v61 = vld [vmem:[#allocation5 + $0x188] sm:$0xff]   ;;  %v2961_v63 = vld [vmem:[#allocation5 + $0x1d0] sm:$0xff]   ;;  %v2964_v2 = vld [vmem:[#allocation5 + $0x158] sm:$0xff]  }
  0x38   :  { %2672 = vmatpush3.bf16.msra.mxu1 %v2929_v15  ;;  %2651 = vmatprep.subr.bf16.mxu0 %v2930_v16  ;;  %v131_v48 = vcombine.high %v108_v42, %v122_v43  ;;  %v130_v49 = vcombine.low %v108_v42, %v122_v43  ;;  %v133_v51 = vcombine.high %v115_v45, %v129_v46  ;;  %v2962_v0 = vld [vmem:[#allocation5 + $0x110] sm:$0xff]   ;;  %v2965_v3 = vld [vmem:[#allocation5 + $0x1d8] sm:$0xff]   ;;  %v2968_v6 = vld [vmem:[#allocation5 + $0x160] sm:$0xff]  }
  0x39   :  { %2673 = vmatprep.subr.bf16.mxu1 %v2931_v17  ;;  %v132_v52 = vcombine.low %v115_v45, %v129_v46  ;;  %v2963_v1 = vld [vmem:[#allocation5 + $0x190] sm:$0xff]   ;;  %v2966_v4 = vld [vmem:[#allocation5 + $0x118] sm:$0xff]   ;;  %v2969_v7 = vld [vmem:[#allocation5 + $0x1e0] sm:$0xff]  }
  0x3a   :  { %v339_v54 = vpack.c.bf16 %v131_v48, %v131_v48  ;;  %v338_v55 = vpack.c.bf16 %v130_v49, %v130_v49  ;;  %v341_v57 = vpack.c.bf16 %v133_v51, %v133_v51  ;;  %v2967_v5 = vld [vmem:[#allocation5 + $0x198] sm:$0xff]   ;;  %v2970_v8 = vld [vmem:[#allocation5 + $0x120] sm:$0xff]   ;;  %v2972_v10 = vld [vmem:[#allocation5 + $0x168] sm:$0xff]  }
  0x3b   :  { %2652 = vmatpush3.bf16.msra.mxu0 %v2932_v18  ;;  %v340_v58 = vpack.c.bf16 %v132_v52, %v132_v52  ;;  %v2971_v9 = vld [vmem:[#allocation5 + $0x1a0] sm:$0xff]   ;;  %v2973_v11 = vld [vmem:[#allocation5 + $0x1e8] sm:$0xff]   ;;  %v2976_v14 = vld [vmem:[#allocation5 + $0x170] sm:$0xff]  }
  0x3c   :  { %2674 = vmatpush3.bf16.msra.mxu1 %v2933_v19  ;;  %2653 = vmatprep.subr.bf16.mxu0 %v2934_v20  ;;  %v2974_v12 = vld [vmem:[#allocation5 + $0x128] sm:$0xff]   ;;  %v2977_v15 = vld [vmem:[#allocation5 + $0x1f0] sm:$0xff]   ;;  %v2980_v18 = vld [vmem:[#allocation5 + $0x178] sm:$0xff]  }
  0x3d   :  { %2675 = vmatprep.subr.bf16.mxu1 %v2935_v21  ;;  %1937 = vmatprep.mubr.bf16.mxu0 %v339_v54  ;;  %v2975_v13 = vld [vmem:[#allocation5 + $0x1a8] sm:$0xff]   ;;  %v2978_v16 = vld [vmem:[#allocation5 + $0x130] sm:$0xff]   ;;  %v2981_v19 = vld [vmem:[#allocation5 + $0x1f8] sm:$0xff]  }
  0x3e   :  { %1977 = vmatprep.mubr.bf16.mxu1 %v341_v57  ;;  %v2979_v17 = vld [vmem:[#allocation5 + $0x1b0] sm:$0xff]   ;;  %v2982_v20 = vld [vmem:[#allocation5 + $0x138] sm:$0xff]   ;;  %v2991_v31 = vld [vmem:[#allocation5 + $0x2c0] sm:$0xff]  }
  0x3f   :  { %2654 = vmatpush3.bf16.msra.mxu0 %v2936_v22  ;;  %v2983_v21 = vld [vmem:[#allocation5 + $0x1b8] sm:$0xff]   ;;  %v2993_v38 = vld [vmem:[#allocation5 + $0x280] sm:$0xff]   ;;  %v2994_v41 = vld [vmem:[#allocation5 + $0x248] sm:$0xff]  }
  0x40   :  { %2676 = vmatpush3.bf16.msra.mxu1 %v2937_v23  ;;  %2655 = vmatprep.subr.bf16.mxu0 %v2938_v27  ;;  %v2984_v22 = vld [vmem:[#allocation3 + $0x8] ss:$48 sps:$4 sm:$0xff]   ;;  %v2988_v24 = vld [vmem:[#allocation3 + $0xc] ss:$48 sps:$4 sm:$0xff]   ;;  %v2999_v48 = vld [vmem:[#allocation5 + $0x2d0] sm:$0xff]  }
  0x41   :  { %2677 = vmatprep.subr.bf16.mxu1 %v2939_v28  ;;  %v2986_v23 = vld [vmem:[#allocation3 + $0x68] ss:$48 sps:$4 sm:$0xff]   ;;  %v2989_v25 = vld [vmem:[#allocation3 + $0x6c] ss:$48 sps:$4 sm:$0xff]   ;;  %v144_v26 = vrot.slane %v2984_v22, %v3255_v37  ;;  %v151_v28 = vrot.slane %v2988_v24, %v3255_v37  ;;  %v3000_v49 = vld [vmem:[#allocation5 + $0x210] sm:$0xff]  }
  0x42   :  { %v158_v27 = vrot.slane %v2986_v23, %v3255_v37  ;;  %v2996_v45 = vld [vmem:[#allocation5 + $0x208] sm:$0xff]   ;;  %v3002_v51 = vld [vmem:[#allocation5 + $0x258] sm:$0xff]   ;;  %v3008_v57 = vld [vmem:[#allocation5 + $0x220] sm:$0xff]  }
  0x43   :  { %2656 = vmatpush3.bf16.msra.mxu0 %v2940_v29  ;;  %v2990_v29 = vld [vmem:[#allocation5 + $0x240] sm:$0xff]   ;;  %v2997_v46 = vld [vmem:[#allocation5 + $0x288] sm:$0xff]   ;;  %v3003_v52 = vld [vmem:[#allocation5 + $0x2d8] sm:$0xff]  }
  0x44   :  { %2678 = vmatpush3.bf16.msra.mxu1 %v2941_v30  ;;  %2657 = vmatprep.subr.bf16.mxu0 %v2942_v33  ;;  %v165_v30 = vrot.slane %v2989_v25, %v3255_v37  ;;  %v167_v32 = vcombine.high %v144_v26, %v158_v27  ;;  %v166_v33 = vcombine.low %v144_v26, %v158_v27  ;;  %v3005_v54 = vld [vmem:[#allocation5 + $0x298] sm:$0xff]   ;;  %v3031_v22 = vld [vmem:[#allocation5 + $0x380] sm:$0xff]   ;;  %v3032_v27 = vld [vmem:[#allocation5 + $0x348] sm:$0xff]  }
  0x45   :  { %2679 = vmatprep.subr.bf16.mxu1 %v2943_v34  ;;  %v2992_v34 = vld [vmem:[#allocation5 + $0x200] sm:$0xff]  }
  0x46   :  { %v343_v39 = vpack.c.bf16 %v167_v32, %v167_v32  ;;  %v342_v40 = vpack.c.bf16 %v166_v33, %v166_v33  ;;  %v3037_v32 = vld [vmem:[#allocation5 + $0x3d0] sm:$0xff]  }
  0x47   :  { %2658 = vmatpush3.bf16.msra.mxu0 %v2944_v35  ;;  %v169_v35 = vcombine.high %v151_v28, %v165_v30  ;;  %v3038_v33 = vld [vmem:[#allocation5 + $0x310] sm:$0xff]  }
  0x48   :  { %2680 = vmatpush3.bf16.msra.mxu1 %v2945_v36  ;;  %2687 = vmatprep.subr.bf16.mxu0 %v2952_v44  ;;  %v168_v36 = vcombine.low %v151_v28, %v165_v30  ;;  %v2995_v44 = vld [vmem:[#allocation5 + $0x2c8] sm:$0xff]  }
  0x49   :  { %2709 = vmatprep.subr.bf16.mxu1 %v2953_v47  ;;  %v345_v42 = vpack.c.bf16 %v169_v35, %v169_v35  ;;  %v2998_v47 = vld [vmem:[#allocation5 + $0x250] sm:$0xff]   ;;  %v3033_v28 = vld [vmem:[#allocation5 + $0x3c8] sm:$0xff]   ;;  %v3040_v35 = vld [vmem:[#allocation5 + $0x358] sm:$0xff]  }
  0x4a   :  { %1938 = vmatmul.mubr.bf16.vlgmr.msra.gmra.mrb[0].mxu0 %v338_v55  ;;  %v344_v43 = vpack.c.bf16 %v168_v36, %v168_v36  ;;  %v3006_v55 = vld [vmem:[#allocation5 + $0x260] sm:$0xff]   ;;  %v3035_v30 = vld [vmem:[#allocation5 + $0x388] sm:$0xff]   ;;  %v3041_v36 = vld [vmem:[#allocation5 + $0x3d8] sm:$0xff]  }
  0x4b   :  { %1978 = vmatmul.mubr.bf16.vlgmr.msra.gmra.mrb[0].mxu1 %v340_v58  ;;  %2688 = vmatpush3.bf16.msra.mxu0 %v2954_v50  ;;  %v3001_v50 = vld [vmem:[#allocation5 + $0x290] sm:$0xff]   ;;  %v3009_v58 = vld [vmem:[#allocation5 + $0x2a0] sm:$0xff]  }
  0x4c   :  { %2710 = vmatpush3.bf16.msra.mxu1 %v2955_v53  ;;  %2689 = vmatprep.subr.bf16.mxu0 %v2956_v56  ;;  %v3004_v53 = vld [vmem:[#allocation5 + $0x218] sm:$0xff]   ;;  %v3007_v56 = vld [vmem:[#allocation5 + $0x2e0] sm:$0xff]  }
  0x4d   :  { %2711 = vmatprep.subr.bf16.mxu1 %v2957_v59  ;;  %2017 = vmatprep.mubr.bf16.mxu0 %v343_v39  ;;  %v3010_v59 = vld [vmem:[#allocation5 + $0x268] sm:$0xff]   ;;  %v3043_v39 = vld [vmem:[#allocation5 + $0x398] sm:$0xff]  }
  0x4e   :  { %2057 = vmatprep.mubr.bf16.mxu1 %v345_v42  ;;  %v3046_v42 = vld [vmem:[#allocation5 + $0x320] sm:$0xff]  }
  0x4f   :  { %2690 = vmatpush3.bf16.msra.mxu0 %v2958_v60  ;;  %v3011_v60 = vld [vmem:[#allocation5 + $0x2e8] sm:$0xff]  }
  0x50   :  { %2712 = vmatpush3.bf16.msra.mxu1 %v2959_v61  ;;  %2691 = vmatprep.subr.bf16.mxu0 %v2960_v62  ;;  %v3012_v61 = vld [vmem:[#allocation5 + $0x228] sm:$0xff]  }
  0x51   :  { %2713 = vmatprep.subr.bf16.mxu1 %v2961_v63  ;;  %v3013_v62 = vld [vmem:[#allocation5 + $0x2a8] sm:$0xff]   ;;  %v3014_v63 = vld [vmem:[#allocation5 + $0x270] sm:$0xff]  }
  0x53   :  { %2692 = vmatpush3.bf16.msra.mxu0 %v2962_v0  ;;  %v3015_v0 = vld [vmem:[#allocation5 + $0x2f0] sm:$0xff]  }
  0x54   :  { %2714 = vmatpush3.bf16.msra.mxu1 %v2963_v1  ;;  %2693 = vmatprep.subr.bf16.mxu0 %v2964_v2  ;;  %v3016_v1 = vld [vmem:[#allocation5 + $0x230] sm:$0xff]  }
  0x55   :  { %2715 = vmatprep.subr.bf16.mxu1 %v2965_v3  ;;  %v3017_v2 = vld [vmem:[#allocation5 + $0x2b0] sm:$0xff]   ;;  %v3018_v3 = vld [vmem:[#allocation5 + $0x278] sm:$0xff]  }
  0x57   :  { %2694 = vmatpush3.bf16.msra.mxu0 %v2966_v4  ;;  %v3019_v4 = vld [vmem:[#allocation5 + $0x2f8] sm:$0xff]  }
  0x58   :  { %2716 = vmatpush3.bf16.msra.mxu1 %v2967_v5  ;;  %2695 = vmatprep.subr.bf16.mxu0 %v2968_v6  ;;  %v3020_v5 = vld [vmem:[#allocation5 + $0x238] sm:$0xff]  }
  0x59   :  { %2717 = vmatprep.subr.bf16.mxu1 %v2969_v7  ;;  %v3021_v6 = vld [vmem:[#allocation5 + $0x2b8] sm:$0xff]   ;;  %v3022_v7 = vld [vmem:[#allocation3 + $0x10] ss:$48 sps:$4 sm:$0xff]  }
  0x5b   :  { %2696 = vmatpush3.bf16.msra.mxu0 %v2970_v8  ;;  %v3024_v8 = vld [vmem:[#allocation3 + $0x70] ss:$48 sps:$4 sm:$0xff]  }
  0x5c   :  { %2718 = vmatpush3.bf16.msra.mxu1 %v2971_v9  ;;  %2697 = vmatprep.subr.bf16.mxu0 %v2972_v10  ;;  %v3026_v9 = vld [vmem:[#allocation3 + $0x14] ss:$48 sps:$4 sm:$0xff]  }
  0x5d   :  { %2719 = vmatprep.subr.bf16.mxu1 %v2973_v11  ;;  %v3027_v10 = vld [vmem:[#allocation3 + $0x74] ss:$48 sps:$4 sm:$0xff]   ;;  %v180_v11 = vrot.slane %v3022_v7, %v3255_v37 }
  0x5e   :  { %v3069_v7 = vld [vmem:[#allocation5 + $0x480] sm:$0xff]  }
  0x5f   :  { %2698 = vmatpush3.bf16.msra.mxu0 %v2974_v12  ;;  %v3028_v12 = vld [vmem:[#allocation5 + $0x340] sm:$0xff]  }
  0x60   :  { %2720 = vmatpush3.bf16.msra.mxu1 %v2975_v13  ;;  %2699 = vmatprep.subr.bf16.mxu0 %v2976_v14  ;;  %v194_v13 = vrot.slane %v3024_v8, %v3255_v37  ;;  %v187_v14 = vrot.slane %v3026_v9, %v3255_v37 }
  0x61   :  { %2721 = vmatprep.subr.bf16.mxu1 %v2977_v15  ;;  %v201_v15 = vrot.slane %v3027_v10, %v3255_v37  ;;  %v3070_v10 = vld [vmem:[#allocation5 + $0x448] sm:$0xff]  }
  0x63   :  { %2700 = vmatpush3.bf16.msra.mxu0 %v2978_v16  ;;  %v3029_v16 = vld [vmem:[#allocation5 + $0x3c0] sm:$0xff]  }
  0x64   :  { %2722 = vmatpush3.bf16.msra.mxu1 %v2979_v17  ;;  %2701 = vmatprep.subr.bf16.mxu0 %v2980_v18  ;;  %v203_v17 = vcombine.high %v180_v11, %v194_v13  ;;  %v205_v18 = vcombine.high %v187_v14, %v201_v15 }
  0x65   :  { %2723 = vmatprep.subr.bf16.mxu1 %v2981_v19  ;;  %v202_v19 = vcombine.low %v180_v11, %v194_v13  ;;  %v3071_v13 = vld [vmem:[#allocation5 + $0x4c8] sm:$0xff]  }
  0x66   :  { %v347_v23 = vpack.c.bf16 %v203_v17, %v203_v17  ;;  %v349_v24 = vpack.c.bf16 %v205_v18, %v205_v18  ;;  %v3075_v17 = vld [vmem:[#allocation5 + $0x4d0] sm:$0xff]  }
  0x67   :  { %2702 = vmatpush3.bf16.msra.mxu0 %v2982_v20  ;;  %v204_v20 = vcombine.low %v187_v14, %v201_v15  ;;  %v346_v25 = vpack.c.bf16 %v202_v19, %v202_v19  ;;  %v3072_v14 = vld [vmem:[#allocation5 + $0x408] sm:$0xff]   ;;  %v3076_v18 = vld [vmem:[#allocation5 + $0x410] sm:$0xff]  }
  0x68   :  { %2724 = vmatpush3.bf16.msra.mxu1 %v2983_v21  ;;  %2731 = vmatprep.subr.bf16.mxu0 %v2990_v29  ;;  %v3030_v21 = vld [vmem:[#allocation5 + $0x300] sm:$0xff]   ;;  %v3034_v29 = vld [vmem:[#allocation5 + $0x308] sm:$0xff]   ;;  %v3077_v19 = vld [vmem:[#allocation5 + $0x490] sm:$0xff]  }
  0x69   :  { %2753 = vmatprep.subr.bf16.mxu1 %v2991_v31  ;;  %v348_v26 = vpack.c.bf16 %v204_v20, %v204_v20  ;;  %v3036_v31 = vld [vmem:[#allocation5 + $0x350] sm:$0xff]   ;;  %v3073_v15 = vld [vmem:[#allocation5 + $0x488] sm:$0xff]   ;;  %v3078_v20 = vld [vmem:[#allocation5 + $0x458] sm:$0xff]  }
  0x6a   :  { %2018 = vmatmul.mubr.bf16.vlgmr.msra.gmra.mrb[4].mxu0 %v342_v40  ;;  %v3044_v40 = vld [vmem:[#allocation5 + $0x360] sm:$0xff]  }
  0x6b   :  { %2058 = vmatmul.mubr.bf16.vlgmr.msra.gmra.mrb[4].mxu1 %v344_v43  ;;  %2732 = vmatpush3.bf16.msra.mxu0 %v2992_v34  ;;  %v3039_v34 = vld [vmem:[#allocation5 + $0x390] sm:$0xff]   ;;  %v3047_v43 = vld [vmem:[#allocation5 + $0x3a0] sm:$0xff]  }
  0x6c   :  { %2754 = vmatpush3.bf16.msra.mxu1 %v2993_v38  ;;  %2733 = vmatprep.subr.bf16.mxu0 %v2994_v41  ;;  %v3042_v38 = vld [vmem:[#allocation5 + $0x318] sm:$0xff]   ;;  %v3045_v41 = vld [vmem:[#allocation5 + $0x3e0] sm:$0xff]  }
  0x6d   :  { %2755 = vmatprep.subr.bf16.mxu1 %v2995_v44  ;;  %2097 = vmatprep.mubr.bf16.mxu0 %v347_v23  ;;  %v3048_v44 = vld [vmem:[#allocation5 + $0x368] sm:$0xff]   ;;  %v3081_v23 = vld [vmem:[#allocation5 + $0x498] sm:$0xff]  }
  0x6e   :  { %2137 = vmatprep.mubr.bf16.mxu1 %v349_v24  ;;  %v3082_v24 = vld [vmem:[#allocation5 + $0x460] sm:$0xff]  }
  0x6f   :  { %2734 = vmatpush3.bf16.msra.mxu0 %v2996_v45  ;;  %v3049_v45 = vld [vmem:[#allocation5 + $0x3e8] sm:$0xff]  }
  0x70   :  { %2756 = vmatpush3.bf16.msra.mxu1 %v2997_v46  ;;  %2735 = vmatprep.subr.bf16.mxu0 %v2998_v47  ;;  %v3050_v46 = vld [vmem:[#allocation5 + $0x328] sm:$0xff]  }
  0x71   :  { %2757 = vmatprep.subr.bf16.mxu1 %v2999_v48  ;;  %v3051_v47 = vld [vmem:[#allocation5 + $0x3a8] sm:$0xff]   ;;  %v3052_v48 = vld [vmem:[#allocation5 + $0x370] sm:$0xff]  }
  0x73   :  { %2736 = vmatpush3.bf16.msra.mxu0 %v3000_v49  ;;  %v3053_v49 = vld [vmem:[#allocation5 + $0x3f0] sm:$0xff]  }
  0x74   :  { %2758 = vmatpush3.bf16.msra.mxu1 %v3001_v50  ;;  %2737 = vmatprep.subr.bf16.mxu0 %v3002_v51  ;;  %v3054_v50 = vld [vmem:[#allocation5 + $0x330] sm:$0xff]  }
  0x75   :  { %2759 = vmatprep.subr.bf16.mxu1 %v3003_v52  ;;  %v3055_v51 = vld [vmem:[#allocation5 + $0x3b0] sm:$0xff]   ;;  %v3056_v52 = vld [vmem:[#allocation5 + $0x378] sm:$0xff]  }
  0x77   :  { %2738 = vmatpush3.bf16.msra.mxu0 %v3004_v53  ;;  %v3057_v53 = vld [vmem:[#allocation5 + $0x3f8] sm:$0xff]  }
  0x78   :  { %2760 = vmatpush3.bf16.msra.mxu1 %v3005_v54  ;;  %2739 = vmatprep.subr.bf16.mxu0 %v3006_v55  ;;  %v3058_v54 = vld [vmem:[#allocation5 + $0x338] sm:$0xff]  }
  0x79   :  { %2761 = vmatprep.subr.bf16.mxu1 %v3007_v56  ;;  %v3059_v55 = vld [vmem:[#allocation5 + $0x3b8] sm:$0xff]  }
  0x7a   :  { %v3060_v56 = vld [vmem:[#allocation3 + $0x18] ss:$48 sps:$4 sm:$0xff]  }
  0x7b   :  { %2740 = vmatpush3.bf16.msra.mxu0 %v3008_v57  ;;  %v3062_v57 = vld [vmem:[#allocation3 + $0x78] ss:$48 sps:$4 sm:$0xff]  }
  0x7c   :  { %2762 = vmatpush3.bf16.msra.mxu1 %v3009_v58  ;;  %2741 = vmatprep.subr.bf16.mxu0 %v3010_v59  ;;  %v3064_v58 = vld [vmem:[#allocation3 + $0x1c] ss:$48 sps:$4 sm:$0xff]  }
  0x7d   :  { %2763 = vmatprep.subr.bf16.mxu1 %v3011_v60  ;;  %v3065_v59 = vld [vmem:[#allocation3 + $0x7c] ss:$48 sps:$4 sm:$0xff]   ;;  %v216_v60 = vrot.slane %v3060_v56, %v3255_v37  ;;  %v3107_v56 = vld [vmem:[#allocation5 + $0x580] sm:$0xff]  }
  0x7f   :  { %2742 = vmatpush3.bf16.msra.mxu0 %v3012_v61  ;;  %v230_v61 = vrot.slane %v3062_v57, %v3255_v37 }
  0x80   :  { %2764 = vmatpush3.bf16.msra.mxu1 %v3013_v62  ;;  %2743 = vmatprep.subr.bf16.mxu0 %v3014_v63  ;;  %v3066_v62 = vld [vmem:[#allocation5 + $0x440] sm:$0xff]   ;;  %v223_v63 = vrot.slane %v3064_v58, %v3255_v37 }
  0x81   :  { %2765 = vmatprep.subr.bf16.mxu1 %v3015_v0  ;;  %v237_v0 = vrot.slane %v3065_v59, %v3255_v37  ;;  %v3108_v59 = vld [vmem:[#allocation5 + $0x548] sm:$0xff]  }
  0x83   :  { %2744 = vmatpush3.bf16.msra.mxu0 %v3016_v1  ;;  %v3067_v1 = vld [vmem:[#allocation5 + $0x4c0] sm:$0xff]  }
  0x84   :  { %2766 = vmatpush3.bf16.msra.mxu1 %v3017_v2  ;;  %2745 = vmatprep.subr.bf16.mxu0 %v3018_v3  ;;  %v239_v2 = vcombine.high %v216_v60, %v230_v61  ;;  %v238_v3 = vcombine.low %v216_v60, %v230_v61 }
  0x85   :  { %2767 = vmatprep.subr.bf16.mxu1 %v3019_v4  ;;  %v3068_v4 = vld [vmem:[#allocation5 + $0x400] sm:$0xff]  }
  0x86   :  { %v351_v8 = vpack.c.bf16 %v239_v2, %v239_v2  ;;  %v350_v9 = vpack.c.bf16 %v238_v3, %v238_v3  ;;  %v3113_v2 = vld [vmem:[#allocation5 + $0x5d0] sm:$0xff]  }
  0x87   :  { %2746 = vmatpush3.bf16.msra.mxu0 %v3020_v5  ;;  %v241_v5 = vcombine.high %v223_v63, %v237_v0  ;;  %v3114_v3 = vld [vmem:[#allocation5 + $0x510] sm:$0xff]  }
  0x88   :  { %2768 = vmatpush3.bf16.msra.mxu1 %v3021_v6  ;;  %2775 = vmatprep.subr.bf16.mxu0 %v3028_v12  ;;  %v240_v6 = vcombine.low %v223_v63, %v237_v0  ;;  %v3110_v63 = vld [vmem:[#allocation5 + $0x508] sm:$0xff]  }
  0x89   :  { %2797 = vmatprep.subr.bf16.mxu1 %v3029_v16  ;;  %v353_v11 = vpack.c.bf16 %v241_v5, %v241_v5  ;;  %v3074_v16 = vld [vmem:[#allocation5 + $0x450] sm:$0xff]   ;;  %v3111_v0 = vld [vmem:[#allocation5 + $0x588] sm:$0xff]   ;;  %v3116_v5 = vld [vmem:[#allocation5 + $0x558] sm:$0xff]  }
  0x8a   :  { %2098 = vmatmul.mubr.bf16.vlgmr.msra.gmra.mrb[8].mxu0 %v346_v25  ;;  %v352_v12 = vpack.c.bf16 %v240_v6, %v240_v6  ;;  %v3083_v25 = vld [vmem:[#allocation5 + $0x4e0] sm:$0xff]   ;;  %v3117_v6 = vld [vmem:[#allocation5 + $0x5d8] sm:$0xff]  }
  0x8b   :  { %2138 = vmatmul.mubr.bf16.vlgmr.msra.gmra.mrb[8].mxu1 %v348_v26  ;;  %2776 = vmatpush3.bf16.msra.mxu0 %v3030_v21  ;;  %v3079_v21 = vld [vmem:[#allocation5 + $0x4d8] sm:$0xff]   ;;  %v3084_v26 = vld [vmem:[#allocation5 + $0x420] sm:$0xff]  }
  0x8c   :  { %2798 = vmatpush3.bf16.msra.mxu1 %v3031_v22  ;;  %2777 = vmatprep.subr.bf16.mxu0 %v3032_v27  ;;  %v3080_v22 = vld [vmem:[#allocation5 + $0x418] sm:$0xff]   ;;  %v3085_v27 = vld [vmem:[#allocation5 + $0x4a0] sm:$0xff]  }
  0x8d   :  { %2799 = vmatprep.subr.bf16.mxu1 %v3033_v28  ;;  %2177 = vmatprep.mubr.bf16.mxu0 %v351_v8  ;;  %v3086_v28 = vld [vmem:[#allocation5 + $0x468] sm:$0xff]   ;;  %v3119_v8 = vld [vmem:[#allocation5 + $0x598] sm:$0xff]  }
  0x8e   :  { %2217 = vmatprep.mubr.bf16.mxu1 %v353_v11  ;;  %v3122_v11 = vld [vmem:[#allocation5 + $0x520] sm:$0xff]  }
  0x8f   :  { %2778 = vmatpush3.bf16.msra.mxu0 %v3034_v29  ;;  %v3087_v29 = vld [vmem:[#allocation5 + $0x4e8] sm:$0xff]  }
  0x90   :  { %2800 = vmatpush3.bf16.msra.mxu1 %v3035_v30  ;;  %2779 = vmatprep.subr.bf16.mxu0 %v3036_v31  ;;  %v3088_v30 = vld [vmem:[#allocation5 + $0x428] sm:$0xff]  }
  0x91   :  { %2801 = vmatprep.subr.bf16.mxu1 %v3037_v32  ;;  %v3089_v31 = vld [vmem:[#allocation5 + $0x4a8] sm:$0xff]   ;;  %v3090_v32 = vld [vmem:[#allocation5 + $0x470] sm:$0xff]  }
  0x93   :  { %2780 = vmatpush3.bf16.msra.mxu0 %v3038_v33  ;;  %v3091_v33 = vld [vmem:[#allocation5 + $0x4f0] sm:$0xff]  }
  0x94   :  { %2802 = vmatpush3.bf16.msra.mxu1 %v3039_v34  ;;  %2781 = vmatprep.subr.bf16.mxu0 %v3040_v35  ;;  %v3092_v34 = vld [vmem:[#allocation5 + $0x430] sm:$0xff]  }
  0x95   :  { %2803 = vmatprep.subr.bf16.mxu1 %v3041_v36  ;;  %v3093_v35 = vld [vmem:[#allocation5 + $0x4b0] sm:$0xff]   ;;  %v3094_v36 = vld [vmem:[#allocation5 + $0x478] sm:$0xff]  }
  0x97   :  { %2782 = vmatpush3.bf16.msra.mxu0 %v3042_v38  ;;  %v3095_v38 = vld [vmem:[#allocation5 + $0x4f8] sm:$0xff]  }
  0x98   :  { %2804 = vmatpush3.bf16.msra.mxu1 %v3043_v39  ;;  %2783 = vmatprep.subr.bf16.mxu0 %v3044_v40  ;;  %v3096_v39 = vld [vmem:[#allocation5 + $0x438] sm:$0xff]  }
  0x99   :  { %2805 = vmatprep.subr.bf16.mxu1 %v3045_v41  ;;  %v3097_v40 = vld [vmem:[#allocation5 + $0x4b8] sm:$0xff]   ;;  %v3098_v41 = vld [vmem:[#allocation3 + $0x20] ss:$48 sps:$4 sm:$0xff]  }
  0x9b   :  { %2784 = vmatpush3.bf16.msra.mxu0 %v3046_v42  ;;  %v3100_v42 = vld [vmem:[#allocation3 + $0x80] ss:$48 sps:$4 sm:$0xff]  }
  0x9c   :  { %2806 = vmatpush3.bf16.msra.mxu1 %v3047_v43  ;;  %2785 = vmatprep.subr.bf16.mxu0 %v3048_v44  ;;  %v3102_v43 = vld [vmem:[#allocation3 + $0x24] ss:$48 sps:$4 sm:$0xff]  }
  0x9d   :  { %2807 = vmatprep.subr.bf16.mxu1 %v3049_v45  ;;  %v3103_v44 = vld [vmem:[#allocation3 + $0x84] ss:$48 sps:$4 sm:$0xff]   ;;  %v252_v45 = vrot.slane %v3098_v41, %v3255_v37 }
  0x9f   :  { %2786 = vmatpush3.bf16.msra.mxu0 %v3050_v46  ;;  %v266_v46 = vrot.slane %v3100_v42, %v3255_v37 }
  0xa0   :  { %2808 = vmatpush3.bf16.msra.mxu1 %v3051_v47  ;;  %2787 = vmatprep.subr.bf16.mxu0 %v3052_v48  ;;  %v259_v47 = vrot.slane %v3102_v43, %v3255_v37  ;;  %v3104_v48 = vld [vmem:[#allocation5 + $0x540] sm:$0xff]  }
  0xa1   :  { %2809 = vmatprep.subr.bf16.mxu1 %v3053_v49  ;;  %v273_v49 = vrot.slane %v3103_v44, %v3255_v37 }
  0xa3   :  { %2788 = vmatpush3.bf16.msra.mxu0 %v3054_v50  ;;  %v3105_v50 = vld [vmem:[#allocation5 + $0x5c0] sm:$0xff]  }
  0xa4   :  { %2810 = vmatpush3.bf16.msra.mxu1 %v3055_v51  ;;  %2789 = vmatprep.subr.bf16.mxu0 %v3056_v52  ;;  %v275_v51 = vcombine.high %v252_v45, %v266_v46  ;;  %v274_v52 = vcombine.low %v252_v45, %v266_v46 }
  0xa5   :  { %2811 = vmatprep.subr.bf16.mxu1 %v3057_v53  ;;  %v3106_v53 = vld [vmem:[#allocation5 + $0x500] sm:$0xff]  }
  0xa6   :  { %v355_v57 = vpack.c.bf16 %v275_v51, %v275_v51  ;;  %v354_v58 = vpack.c.bf16 %v274_v52, %v274_v52 }
  0xa7   :  { %2790 = vmatpush3.bf16.msra.mxu0 %v3058_v54  ;;  %v277_v54 = vcombine.high %v259_v47, %v273_v49 }
  0xa8   :  { %2812 = vmatpush3.bf16.msra.mxu1 %v3059_v55  ;;  %2819 = vmatprep.subr.bf16.mxu0 %v3066_v62  ;;  %v276_v55 = vcombine.low %v259_v47, %v273_v49  ;;  %v3109_v62 = vld [vmem:[#allocation5 + $0x5c8] sm:$0xff]  }
  0xa9   :  { %2841 = vmatprep.subr.bf16.mxu1 %v3067_v1  ;;  %v357_v60 = vpack.c.bf16 %v277_v54, %v277_v54  ;;  %v3112_v1 = vld [vmem:[#allocation5 + $0x550] sm:$0xff]  }
  0xaa   :  { %2178 = vmatmul.mubr.bf16.vlgmr.msra.gmra.mrb[12].mxu0 %v350_v9  ;;  %v356_v61 = vpack.c.bf16 %v276_v55, %v276_v55  ;;  %v3120_v9 = vld [vmem:[#allocation5 + $0x560] sm:$0xff]  }
  0xab   :  { %2218 = vmatmul.mubr.bf16.vlgmr.msra.gmra.mrb[12].mxu1 %v352_v12  ;;  %2820 = vmatpush3.bf16.msra.mxu0 %v3068_v4  ;;  %v3115_v4 = vld [vmem:[#allocation5 + $0x590] sm:$0xff]   ;;  %v3123_v12 = vld [vmem:[#allocation5 + $0x5a0] sm:$0xff]  }
  0xac   :  { %2842 = vmatpush3.bf16.msra.mxu1 %v3069_v7  ;;  %2821 = vmatprep.subr.bf16.mxu0 %v3070_v10  ;;  %v3118_v7 = vld [vmem:[#allocation5 + $0x518] sm:$0xff]   ;;  %v3121_v10 = vld [vmem:[#allocation5 + $0x5e0] sm:$0xff]  }
  0xad   :  { %2843 = vmatprep.subr.bf16.mxu1 %v3071_v13  ;;  %2257 = vmatprep.mubr.bf16.mxu0 %v355_v57  ;;  %v3124_v13 = vld [vmem:[#allocation5 + $0x568] sm:$0xff]  }
  0xae   :  { %2297 = vmatprep.mubr.bf16.mxu1 %v357_v60 }
  0xaf   :  { %2822 = vmatpush3.bf16.msra.mxu0 %v3072_v14  ;;  %v3125_v14 = vld [vmem:[#allocation5 + $0x5e8] sm:$0xff]  }
  0xb0   :  { %2844 = vmatpush3.bf16.msra.mxu1 %v3073_v15  ;;  %2823 = vmatprep.subr.bf16.mxu0 %v3074_v16  ;;  %v3126_v15 = vld [vmem:[#allocation5 + $0x528] sm:$0xff]  }
  0xb1   :  { %2845 = vmatprep.subr.bf16.mxu1 %v3075_v17  ;;  %v3127_v16 = vld [vmem:[#allocation5 + $0x5a8] sm:$0xff]   ;;  %v3128_v17 = vld [vmem:[#allocation5 + $0x570] sm:$0xff]  }
  0xb3   :  { %2824 = vmatpush3.bf16.msra.mxu0 %v3076_v18  ;;  %v3129_v18 = vld [vmem:[#allocation5 + $0x5f0] sm:$0xff]  }
  0xb4   :  { %2846 = vmatpush3.bf16.msra.mxu1 %v3077_v19  ;;  %2825 = vmatprep.subr.bf16.mxu0 %v3078_v20  ;;  %v3130_v19 = vld [vmem:[#allocation5 + $0x530] sm:$0xff]  }
  0xb5   :  { %2847 = vmatprep.subr.bf16.mxu1 %v3079_v21  ;;  %v3131_v20 = vld [vmem:[#allocation5 + $0x5b0] sm:$0xff]   ;;  %v3132_v21 = vld [vmem:[#allocation5 + $0x578] sm:$0xff]  }
  0xb7   :  { %2826 = vmatpush3.bf16.msra.mxu0 %v3080_v22  ;;  %v3133_v22 = vld [vmem:[#allocation5 + $0x5f8] sm:$0xff]  }
  0xb8   :  { %2848 = vmatpush3.bf16.msra.mxu1 %v3081_v23  ;;  %2827 = vmatprep.subr.bf16.mxu0 %v3082_v24  ;;  %v3134_v23 = vld [vmem:[#allocation5 + $0x538] sm:$0xff]  }
  0xb9   :  { %2849 = vmatprep.subr.bf16.mxu1 %v3083_v25  ;;  %v3135_v24 = vld [vmem:[#allocation5 + $0x5b8] sm:$0xff]  }
  0xba   :  { %v3136_v25 = vld [vmem:[#allocation3 + $0x28] ss:$48 sps:$4 sm:$0xff]  }
  0xbb   :  { %2828 = vmatpush3.bf16.msra.mxu0 %v3084_v26  ;;  %v3138_v26 = vld [vmem:[#allocation3 + $0x88] ss:$48 sps:$4 sm:$0xff]  }
  0xbc   :  { %2850 = vmatpush3.bf16.msra.mxu1 %v3085_v27  ;;  %2829 = vmatprep.subr.bf16.mxu0 %v3086_v28  ;;  %v3140_v27 = vld [vmem:[#allocation3 + $0x2c] ss:$48 sps:$4 sm:$0xff]  }
  0xbd   :  { %2851 = vmatprep.subr.bf16.mxu1 %v3087_v29  ;;  %v3141_v28 = vld [vmem:[#allocation3 + $0x8c] ss:$48 sps:$4 sm:$0xff]   ;;  %v288_v29 = vrot.slane %v3136_v25, %v3255_v37 }
  0xbf   :  { %2830 = vmatpush3.bf16.msra.mxu0 %v3088_v30  ;;  %v302_v30 = vrot.slane %v3138_v26, %v3255_v37 }
  0xc0   :  { %2852 = vmatpush3.bf16.msra.mxu1 %v3089_v31  ;;  %2831 = vmatprep.subr.bf16.mxu0 %v3090_v32  ;;  %v295_v31 = vrot.slane %v3140_v27, %v3255_v37  ;;  %v309_v32 = vrot.slane %v3141_v28, %v3255_v37  ;;  %v2448_v37 = vld [vmem:[%s3295_s2] ss:$0 sm:$0xff] }
  0xc1   :  { %2853 = vmatprep.subr.bf16.mxu1 %v3091_v33  ;;  %v311_v33 = vcombine.high %v288_v29, %v302_v30 }
  0xc3   :  { %2832 = vmatpush3.bf16.msra.mxu0 %v3092_v34  ;;  %v313_v34 = vcombine.high %v295_v31, %v309_v32 }
  0xc4   :  { %2854 = vmatpush3.bf16.msra.mxu1 %v3093_v35  ;;  %2833 = vmatprep.subr.bf16.mxu0 %v3094_v36  ;;  %v310_v35 = vcombine.low %v288_v29, %v302_v30  ;;  %v312_v36 = vcombine.low %v295_v31, %v309_v32 }
  0xc5   :  { %2855 = vmatprep.subr.bf16.mxu1 %v3095_v38  ;;  %v359_v38 = vpack.c.bf16 %v311_v33, %v311_v33 }
  0xc6   :  { %v360_v41 = vpack.c.bf16 %v312_v36, %v312_v36 }
  0xc7   :  { %2834 = vmatpush3.bf16.msra.mxu0 %v3096_v39  ;;  %v361_v39 = vpack.c.bf16 %v313_v34, %v313_v34 }
  0xc8   :  { %2856 = vmatpush3.bf16.msra.mxu1 %v3097_v40  ;;  %2863 = vmatprep.subr.bf16.mxu0 %v3104_v48  ;;  %v358_v40 = vpack.c.bf16 %v310_v35, %v310_v35 }
  0xc9   :  { %2885 = vmatprep.subr.bf16.mxu1 %v3105_v50 }
  0xca   :  { %2258 = vmatmul.mubr.bf16.vlgmr.msra.gmra.mrb[16].mxu0 %v354_v58 }
  0xcb   :  { %2298 = vmatmul.mubr.bf16.vlgmr.msra.gmra.mrb[16].mxu1 %v356_v61  ;;  %2864 = vmatpush3.bf16.msra.mxu0 %v3106_v53 }
  0xcc   :  { %2886 = vmatpush3.bf16.msra.mxu1 %v3107_v56  ;;  %2865 = vmatprep.subr.bf16.mxu0 %v3108_v59 }
  0xcd   :  { %2887 = vmatprep.subr.bf16.mxu1 %v3109_v62  ;;  %2337 = vmatprep.mubr.bf16.mxu0 %v359_v38 }
  0xce   :  { %2377 = vmatprep.mubr.bf16.mxu1 %v361_v39 }
  0xcf   :  { %2866 = vmatpush3.bf16.msra.mxu0 %v3110_v63 }
  0xd0   :  { %2888 = vmatpush3.bf16.msra.mxu1 %v3111_v0  ;;  %2867 = vmatprep.subr.bf16.mxu0 %v3112_v1 }
  0xd1   :  { %2889 = vmatprep.subr.bf16.mxu1 %v3113_v2 }
  0xd3   :  { %2868 = vmatpush3.bf16.msra.mxu0 %v3114_v3 }
  0xd4   :  { %2890 = vmatpush3.bf16.msra.mxu1 %v3115_v4  ;;  %2869 = vmatprep.subr.bf16.mxu0 %v3116_v5 }
  0xd5   :  { %2891 = vmatprep.subr.bf16.mxu1 %v3117_v6 }
  0xd7   :  { %2870 = vmatpush3.bf16.msra.mxu0 %v3118_v7 }
  0xd8   :  { %2892 = vmatpush3.bf16.msra.mxu1 %v3119_v8  ;;  %2871 = vmatprep.subr.bf16.mxu0 %v3120_v9 }
  0xd9   :  { %2893 = vmatprep.subr.bf16.mxu1 %v3121_v10 }
  0xdb   :  { %2872 = vmatpush3.bf16.msra.mxu0 %v3122_v11 }
  0xdc   :  { %2894 = vmatpush3.bf16.msra.mxu1 %v3123_v12  ;;  %2873 = vmatprep.subr.bf16.mxu0 %v3124_v13 }
  0xdd   :  { %2895 = vmatprep.subr.bf16.mxu1 %v3125_v14 }
  0xdf   :  { %2874 = vmatpush3.bf16.msra.mxu0 %v3126_v15 }
  0xe0   :  { %2896 = vmatpush3.bf16.msra.mxu1 %v3127_v16  ;;  %2875 = vmatprep.subr.bf16.mxu0 %v3128_v17 }
  0xe1   :  { %2897 = vmatprep.subr.bf16.mxu1 %v3129_v18 }
  0xe3   :  { %2876 = vmatpush3.bf16.msra.mxu0 %v3130_v19 }
  0xe4   :  { %2898 = vmatpush3.bf16.msra.mxu1 %v3131_v20  ;;  %2877 = vmatprep.subr.bf16.mxu0 %v3132_v21 }
  0xe5   :  { %2899 = vmatprep.subr.bf16.mxu1 %v3133_v22 }
  0xe7   :  { %2878 = vmatpush3.bf16.msra.mxu0 %v3134_v23 }
  0xe8   :  { %2900 = vmatpush3.bf16.msra.mxu1 %v3135_v24 }
  0xea   :  { %2338 = vmatmul.mubr.bf16.vlgmr.msra.gmra.mrb[20].mxu0 %v358_v40 }
  0xeb   :  { %2378 = vmatmul.mubr.bf16.vlgmr.msra.gmra.mrb[20].mxu1 %v360_v41 }
 0x11d   :  { %v2659_v42 = vpop.f32.mrb[0].mxu0 }
 0x11e   :  { %v2681_v43 = vpop.f32.mrb[0].mxu1  ;;  %v2660_v44 = vpop.f32.mrb[1].mxu0 }
 0x11f   :  { %v2661_v45 = vadd.f32 %v2660_v44, %v2659_v42  ;;  %v2682_v46 = vpop.f32.mrb[1].mxu1  ;;  %v2662_v47 = vpop.f32.mrb[2].mxu0 }
 0x120   :  { %v2683_v48 = vadd.f32 %v2682_v46, %v2681_v43  ;;  %v2684_v49 = vpop.f32.mrb[2].mxu1  ;;  %v2663_v50 = vpop.f32.mrb[3].mxu0 }
 0x121   :  { %v1940_v51 = vadd.f32 %v2661_v45, %v2448_v37  ;;  %v2685_v52 = vpop.f32.mrb[3].mxu1  ;;  %v2641_v50 = vld [vmem:[%s3296_s3] ss:$0 sm:$0xff] }
 0x123   :  { %v1980_v53 = vadd.f32 %v2683_v48, %v1940_v51 }
 0x13d   :  { %v2703_v54 = vpop.f32.mrb[4].mxu0 }
 0x13e   :  { %v2725_v55 = vpop.f32.mrb[4].mxu1  ;;  %v2704_v56 = vpop.f32.mrb[5].mxu0 }
 0x13f   :  { %v2705_v57 = vadd.f32 %v2704_v56, %v2703_v54  ;;  %v2726_v58 = vpop.f32.mrb[5].mxu1  ;;  %v2706_v59 = vpop.f32.mrb[6].mxu0 }
 0x140   :  { %v2727_v60 = vadd.f32 %v2726_v58, %v2725_v55  ;;  %v2728_v61 = vpop.f32.mrb[6].mxu1  ;;  %v2707_v62 = vpop.f32.mrb[7].mxu0 }
 0x141   :  { %v2020_v63 = vadd.f32 %v2705_v57, %v1980_v53  ;;  %v2729_v0 = vpop.f32.mrb[7].mxu1  ;;  %v2397_v53 = vstv %s3297_s4 }
 0x143   :  { %v2060_v1 = vadd.f32 %v2727_v60, %v2020_v63 }
 0x15d   :  { %v2747_v2 = vpop.f32.mrb[8].mxu0 }
 0x15e   :  { %v2769_v3 = vpop.f32.mrb[8].mxu1  ;;  %v2748_v4 = vpop.f32.mrb[9].mxu0 }
 0x15f   :  { %v2770_v5 = vpop.f32.mrb[9].mxu1  ;;  %v2749_v6 = vadd.f32 %v2748_v4, %v2747_v2  ;;  %v2750_v8 = vpop.f32.mrb[10].mxu0 }
 0x160   :  { %v2771_v7 = vadd.f32 %v2770_v5, %v2769_v3  ;;  %v2772_v9 = vpop.f32.mrb[10].mxu1  ;;  %v2751_v10 = vpop.f32.mrb[11].mxu0 }
 0x161   :  { %v2773_v11 = vpop.f32.mrb[11].mxu1  ;;  %v2100_v12 = vadd.f32 %v2749_v6, %v2060_v1 }
 0x163   :  { %v2140_v13 = vadd.f32 %v2771_v7, %v2100_v12 }
 0x17d   :  { %v2791_v14 = vpop.f32.mrb[12].mxu0 }
 0x17e   :  { %v2813_v15 = vpop.f32.mrb[12].mxu1  ;;  %v2792_v16 = vpop.f32.mrb[13].mxu0 }
 0x17f   :  { %v2793_v17 = vadd.f32 %v2792_v16, %v2791_v14  ;;  %v2814_v18 = vpop.f32.mrb[13].mxu1  ;;  %v2794_v19 = vpop.f32.mrb[14].mxu0 }
 0x180   :  { %v2815_v20 = vadd.f32 %v2814_v18, %v2813_v15  ;;  %v2816_v21 = vpop.f32.mrb[14].mxu1  ;;  %v2795_v22 = vpop.f32.mrb[15].mxu0 }
 0x181   :  { %v2180_v23 = vadd.f32 %v2793_v17, %v2140_v13  ;;  %v2817_v24 = vpop.f32.mrb[15].mxu1 }
 0x183   :  { %v2220_v25 = vadd.f32 %v2815_v20, %v2180_v23 }
 0x19d   :  { %v2835_v26 = vpop.f32.mrb[16].mxu0 }
 0x19e   :  { %v2857_v27 = vpop.f32.mrb[16].mxu1  ;;  %v2836_v28 = vpop.f32.mrb[17].mxu0 }
 0x19f   :  { %v2837_v29 = vadd.f32 %v2836_v28, %v2835_v26  ;;  %v2858_v30 = vpop.f32.mrb[17].mxu1  ;;  %v2838_v31 = vpop.f32.mrb[18].mxu0 }
 0x1a0   :  { %v2859_v32 = vadd.f32 %v2858_v30, %v2857_v27  ;;  %v2860_v33 = vpop.f32.mrb[18].mxu1  ;;  %v2839_v34 = vpop.f32.mrb[19].mxu0 }
 0x1a1   :  { %v2260_v35 = vadd.f32 %v2837_v29, %v2220_v25  ;;  %v2861_v36 = vpop.f32.mrb[19].mxu1 }
 0x1a3   :  { %v2300_v38 = vadd.f32 %v2859_v32, %v2260_v35 }
 0x1bd   :  { %v2879_v39 = vpop.f32.mrb[20].mxu0 }
 0x1be   :  { %v2901_v40 = vpop.f32.mrb[20].mxu1  ;;  %v2880_v41 = vpop.f32.mrb[21].mxu0 }
 0x1bf   :  { %v2902_v42 = vpop.f32.mrb[21].mxu1  ;;  %v2881_v43 = vadd.f32 %v2880_v41, %v2879_v39  ;;  %v2882_v44 = vpop.f32.mrb[22].mxu0 }
 0x1c0   :  { %v2903_v37 = vadd.f32 %v2902_v42, %v2901_v40  ;;  %v2904_v45 = vpop.f32.mrb[22].mxu1  ;;  %v2883_v46 = vpop.f32.mrb[23].mxu0 }
 0x1c1   :  { %v2905_v47 = vpop.f32.mrb[23].mxu1  ;;  %v2340_v48 = vadd.f32 %v2881_v43, %v2300_v38 }
 0x1c3   :  { %v2380_v49 = vadd.f32 %v2903_v37, %v2340_v48 }
 0x1c5   :  { %v2385_v51 = vmax.f32 %v2380_v49, 0.0 }
 0x1c7   :  { %v2393_v52 = vmul.f32 %v2641_v50, %v2385_v51 }
 0x1c9   :  { %2394 = vadd.xlane.f32.xlu0 %v2393_v52 }
 0x256   :  { %v2395_v54 = vpop.xlane.xlu0 %2394 }
 0x257   :  { %v2398_v55 = vadd.f32 %v2397_v53, %v2395_v54 }
 0x259   :  { %v2642_v56 = vmul.f32 -1.442695, %v2398_v55 }
 0x25b   :  { %3142 = vpow2.f32 %v2642_v56 }
 0x265   :  { %v3143_v57 = vpop.eup %3142 }
 0x266   :  { %v2402_v58 = vadd.f32 1.0, %v3143_v57 }
 0x268   :  { %3144 = vrcp.f32 %v2402_v58 }
 0x272   :  { %v3145_v59 = vpop.eup %3144 }
 0x273   :  { %2406 = vst.msk [vmem:[#allocation7] sm:$0xff] %vm2405_vm0, %v3145_v59 }
 0x27a   :  { %v2424_v60 = vld [vmem:[#allocation7] sm:$0x3] }
 0x27b   :  { %2425 = vst [vmem:[%s3298_s5] sm:$0x3] %v2424_v60 }
 0x27c   :  { %2442 = vsyncpa [#allocation4], 1 }
 0x27d   :  { %2443 = vsyncpa [#allocation6], 1 }

</bundles_post_ra>
